<compile_context>
chip_gen: v7x
topology: tpu7x:2x2x1
jax: 0.10.0
libtpu: 0.0.40
codegen_flags: <defaults>
</compile_context>

<pallas_src>
import functools

import jax
import jax.numpy as jnp
from jax import lax
from jax.experimental import pallas as pl
from jax.experimental.pallas import tpu as pltpu

DROP_RATE = 0.2
KEEP_SCALE = 1.0 / (1.0 - DROP_RATE)
_DROP_THRESH_U32 = int(DROP_RATE * (1 << 32))   # drop iff bits < threshold (P ~= 0.2)


def _round_up(x, m):
    return ((x + m - 1) // m) * m


def mlp_drop_kernel(seed_ref,          # SMEM (1,) int32
                    x_ref,             # (TB, D0) f32    -- streamed per batch tile
                    w1_ref, b1_ref,    # (D0, D1) bf16, (1, D1) f32  -- VMEM resident
                    w23_ref, b23_ref,  # (D1, D3) bf16, (1, D3) f32  -- VMEM resident
                    o_ref,             # (TB, D3) f32    -- streamed per batch tile
                    *, use_hw_prng):
    # ---- layer_1: Linear (bf16 operands, f32 accumulate) + tanh ---------------------
    x = x_ref[...].astype(jnp.bfloat16)           # in-kernel cast, hidden under the dot
    h = jnp.dot(x, w1_ref[...], preferred_element_type=jnp.float32)
    h = jnp.tanh(h + b1_ref[...])

    # ---- dropout(p=0.2, training=True) -----------------------------------------------
    if use_hw_prng:
        pltpu.prng_seed(seed_ref[0], pl.program_id(0))
        bits = pltpu.bitcast(pltpu.prng_random_bits(h.shape), jnp.uint32)
    else:
        # Interpret-mode fallback: counter-based lowbias32 hash (no HW PRNG lowering).
        tb, d1 = h.shape
        row = lax.broadcasted_iota(jnp.int32, (tb, d1), 0)
        col = lax.broadcasted_iota(jnp.int32, (tb, d1), 1)
        gidx = (pl.program_id(0) * tb + row) * d1 + col
        r = gidx.astype(jnp.uint32) + seed_ref[0].astype(jnp.uint32) * jnp.uint32(0x9E3779B9)
        r = (r ^ (r >> 16)) * jnp.uint32(0x7FEB352D)
        r = (r ^ (r >> 15)) * jnp.uint32(0x846CA68B)
        bits = r ^ (r >> 16)
    keep = bits >= jnp.uint32(_DROP_THRESH_U32)   # P(keep) ~= 0.8
    h = jnp.where(keep, h * KEEP_SCALE, 0.0)

    # ---- layer_2 @ layer_3 folded into one matmul (no nonlinearity between them) ----
    logits = jnp.dot(h.astype(jnp.bfloat16), w23_ref[...],
                     preferred_element_type=jnp.float32) + b23_ref[...]

    # ---- log_softmax over dim=1 ------------------------------------------------------
    m = jnp.max(logits, axis=1, keepdims=True)
    s = logits - m
    lse = jnp.log(jnp.sum(jnp.exp(s), axis=1, keepdims=True))
    o_ref[...] = (s - lse).astype(o_ref.dtype)


def mlp_drop_forward(x_nchw, params, seed, *, tile_b=4096):
    """Fused MLP_Drop forward.  x_nchw: (B, ...) float32 with prod(...) == layer_sizes[0].
    params: w{i}: (in, out) and b{i}: (1, out)  (weights transposed vs PyTorch)."""
    B = x_nchw.shape[0]
    w1, b1 = params["w1"], params["b1"]
    w2, b2 = params["w2"], params["b2"]
    w3, b3 = params["w3"], params["b3"]
    d0, d1 = w1.shape
    d3 = w3.shape[1]

    # Fold layer_2 / layer_3 (exact: there is no nonlinearity between them).
    w23 = (w2.astype(jnp.float32) @ w3.astype(jnp.float32)).astype(jnp.bfloat16)
    b23 = b2.astype(jnp.float32) @ w3.astype(jnp.float32) + b3.astype(jnp.float32)

    # Batch tiling: big tiles (amortize per-step overhead), but keep >=2 grid steps when
    # the batch is large enough so v7x's two TensorCores both get work ("parallel" axis).
    b_rounded = _round_up(B, 8)
    n_tiles = max(1, pl.cdiv(b_rounded, tile_b))
    if n_tiles < 2 and b_rounded >= 512:
        n_tiles = 2
    tb = _round_up(pl.cdiv(b_rounded, n_tiles), 8)
    b_pad = n_tiles * tb

    x = x_nchw.reshape(B, d0)                     # x.view(-1, layer_sizes[0]); stays f32
    if b_pad != B:                                # padded rows give garbage logits, sliced off
        x = jnp.pad(x, ((0, b_pad - B), (0, 0)))

    w1_bf = w1.astype(jnp.bfloat16)
    b1_f32 = b1.astype(jnp.float32)
    seed_arr = jnp.asarray([seed], dtype=jnp.int32)

    use_hw_prng = jax.default_backend() == "tpu"
    kernel = functools.partial(mlp_drop_kernel, use_hw_prng=use_hw_prng)

    const = lambda i: (0, 0)                      # weights stay VMEM-resident across tiles
    out = pl.pallas_call(
        kernel,
        out_shape=jax.ShapeDtypeStruct((b_pad, d3), jnp.float32),
        grid=(n_tiles,),
        in_specs=[
            pl.BlockSpec(memory_space=pltpu.MemorySpace.SMEM),   # seed scalar
            pl.BlockSpec((tb, d0), lambda i: (i, 0)),            # x tile (streamed)
            pl.BlockSpec((d0, d1), const),                       # w1
            pl.BlockSpec((1, d1), const),                        # b1
            pl.BlockSpec((d1, d3), const),                       # w23 (folded)
            pl.BlockSpec((1, d3), const),                        # b23 (folded)
        ],
        out_specs=pl.BlockSpec((tb, d3), lambda i: (i, 0)),      # compact (tb, 10) output
        compiler_params=pltpu.CompilerParams(dimension_semantics=("parallel",)),
    )(seed_arr, x, w1_bf, b1_f32, w23, b23)

    return out if b_pad == B else out[:B]


def init_params(key, layer_sizes):
    """Deterministic nn.Linear-style init: U(-1/sqrt(fan_in), 1/sqrt(fan_in)).
    Weights stored as (in, out) — transposed relative to PyTorch."""
    params = {}
    for i in range(1, len(layer_sizes)):
        fan_in, fan_out = layer_sizes[i - 1], layer_sizes[i]
        key, kw, kb = jax.random.split(key, 3)
        bound = 1.0 / (fan_in ** 0.5)
        params[f"w{i}"] = jax.random.uniform(
            kw, (fan_in, fan_out), jnp.float32, -bound, bound)
        params[f"b{i}"] = jax.random.uniform(
            kb, (1, fan_out), jnp.float32, -bound, bound)
    return params


if __name__ == "__main__":
    # Small MNIST-like configuration: n_layers=4, layer_sizes=[64, 32, 32, 10]
    layer_sizes = [64, 32, 32, 10]
    B, C, H, W = 2, 1, 8, 8                      # C*H*W == layer_sizes[0]

    key = jax.random.PRNGKey(0)
    key, kx = jax.random.split(key)
    x = jax.random.normal(kx, (B, C, H, W), jnp.float32)

    params = init_params(jax.random.PRNGKey(0), layer_sizes)

    out = mlp_drop_forward(x, params, seed=1234)
    out = jax.block_until_ready(out)

    # sanity: log_softmax rows must exponentiate-sum to 1
    row_sums = jnp.sum(jnp.exp(out), axis=1)
    assert out.shape == (B, layer_sizes[-1])
    assert bool(jnp.all(jnp.isfinite(out)))
    assert bool(jnp.allclose(row_sums, 1.0, atol=1e-5))

    print("KERNEL_OK")
</pallas_src>

<mosaic_0001>
module attributes {stable_mosaic.version = 11 : i64} {
  func.func @mlp_drop_kernel(%arg0: i32, %arg1: memref<1xi32, #tpu.memory_space<smem>>, %arg2: memref<8x64xf32, #tpu.memory_space<vmem>>, %arg3: memref<64x32xbf16, #tpu.memory_space<vmem>>, %arg4: memref<1x32xf32, #tpu.memory_space<vmem>>, %arg5: memref<32x10xbf16, #tpu.memory_space<vmem>>, %arg6: memref<1x10xf32, #tpu.memory_space<vmem>>, %arg7: memref<8x10xf32, #tpu.memory_space<vmem>>) attributes {dimension_semantics = [#tpu.dimension_semantics<parallel>], iteration_bounds = array<i64: 1>, scalar_prefetch = 0 : i64, scratch_operands = 0 : i64, tpu.core_type = #tpu.core_type<tc>, window_params = [{transform_indices = @transform_0, window_bounds = array<i64: 1>}, {transform_indices = @transform_1, window_bounds = array<i64: 8, 64>}, {pipeline_mode = #tpu.pipeline_mode<synchronous>, transform_indices = @transform_2, window_bounds = array<i64: 64, 32>}, {pipeline_mode = #tpu.pipeline_mode<synchronous>, transform_indices = @transform_3, window_bounds = array<i64: 1, 32>}, {pipeline_mode = #tpu.pipeline_mode<synchronous>, transform_indices = @transform_4, window_bounds = array<i64: 32, 10>}, {pipeline_mode = #tpu.pipeline_mode<synchronous>, transform_indices = @transform_5, window_bounds = array<i64: 1, 10>}, {transform_indices = @transform_6, window_bounds = array<i64: 8, 10>}]} {
    %c0 = arith.constant 0 : index
    %c0_0 = arith.constant 0 : index
    %0 = vector.load %arg2[%c0, %c0_0] : memref<8x64xf32, #tpu.memory_space<vmem>>, vector<8x64xf32>
    %1 = arith.truncf %0 : vector<8x64xf32> to vector<8x64xbf16>
    %c0_1 = arith.constant 0 : index
    %c0_2 = arith.constant 0 : index
    %2 = vector.load %arg3[%c0_1, %c0_2] : memref<64x32xbf16, #tpu.memory_space<vmem>>, vector<64x32xbf16>
    %cst = arith.constant dense<0.000000e+00> : vector<8x32xf32>
    %3 = tpu.matmul %1, %2, %cst {dimension_numbers = #tpu.dot_dimension_numbers<[1], [0], [0], [1], [0, 0, 1, 1], [], []>} : vector<8x64xbf16>, vector<64x32xbf16>, vector<8x32xf32> -> vector<8x32xf32>
    %c0_3 = arith.constant 0 : index
    %c0_4 = arith.constant 0 : index
    %4 = vector.load %arg4[%c0_3, %c0_4] : memref<1x32xf32, #tpu.memory_space<vmem>>, vector<1x32xf32>
    %5 = vector.broadcast %4 : vector<1x32xf32> to vector<8x32xf32>
    %6 = arith.addf %3, %5 : vector<8x32xf32>
    %7 = math.tanh %6 : vector<8x32xf32>
    %8 = tpu.iota {dimensions = array<i32: 0>} : vector<8x32xi32>
    %9 = tpu.iota {dimensions = array<i32: 1>} : vector<8x32xi32>
    %c8_i32 = arith.constant 8 : i32
    %10 = arith.muli %arg0, %c8_i32 : i32
    %11 = vector.broadcast %10 : i32 to vector<8x32xi32>
    %12 = arith.addi %11, %8 : vector<8x32xi32>
    %c32_i32 = arith.constant 32 : i32
    %13 = vector.broadcast %c32_i32 : i32 to vector<8x32xi32>
    %14 = arith.muli %12, %13 : vector<8x32xi32>
    %15 = arith.addi %14, %9 : vector<8x32xi32>
    %c0_5 = arith.constant 0 : index
    %16 = memref.load %arg1[%c0_5] : memref<1xi32, #tpu.memory_space<smem>>
    %c-1640531527_i32 = arith.constant -1640531527 : i32
    %17 = arith.muli %16, %c-1640531527_i32 : i32
    %18 = vector.broadcast %17 : i32 to vector<8x32xi32>
    %19 = arith.addi %15, %18 : vector<8x32xi32>
    %c16_i32 = arith.constant 16 : i32
    %20 = vector.broadcast %c16_i32 : i32 to vector<8x32xi32>
    %21 = arith.shrui %19, %20 : vector<8x32xi32>
    %22 = arith.xori %19, %21 : vector<8x32xi32>
    %c2146121005_i32 = arith.constant 2146121005 : i32
    %23 = vector.broadcast %c2146121005_i32 : i32 to vector<8x32xi32>
    %24 = arith.muli %22, %23 : vector<8x32xi32>
    %c15_i32 = arith.constant 15 : i32
    %25 = vector.broadcast %c15_i32 : i32 to vector<8x32xi32>
    %26 = arith.shrui %24, %25 : vector<8x32xi32>
    %27 = arith.xori %24, %26 : vector<8x32xi32>
    %c-2073254261_i32 = arith.constant -2073254261 : i32
    %28 = vector.broadcast %c-2073254261_i32 : i32 to vector<8x32xi32>
    %29 = arith.muli %27, %28 : vector<8x32xi32>
    %c16_i32_6 = arith.constant 16 : i32
    %30 = vector.broadcast %c16_i32_6 : i32 to vector<8x32xi32>
    %31 = arith.shrui %29, %30 : vector<8x32xi32>
    %32 = arith.xori %29, %31 : vector<8x32xi32>
    %c858993459_i32 = arith.constant 858993459 : i32
    %33 = vector.broadcast %c858993459_i32 : i32 to vector<8x32xi32>
    %34 = arith.cmpi uge, %32, %33 : vector<8x32xi32>
    %cst_7 = arith.constant 1.250000e+00 : f32
    %35 = vector.broadcast %cst_7 : f32 to vector<8x32xf32>
    %36 = arith.mulf %7, %35 : vector<8x32xf32>
    %cst_8 = arith.constant 0.000000e+00 : f32
    %37 = vector.broadcast %cst_8 : f32 to vector<8x32xf32>
    %38 = arith.select %34, %36, %37 : vector<8x32xi1>, vector<8x32xf32>
    %39 = arith.truncf %38 : vector<8x32xf32> to vector<8x32xbf16>
    %c0_9 = arith.constant 0 : index
    %c0_10 = arith.constant 0 : index
    %40 = vector.load %arg5[%c0_9, %c0_10] : memref<32x10xbf16, #tpu.memory_space<vmem>>, vector<32x10xbf16>
    %cst_11 = arith.constant dense<0.000000e+00> : vector<8x10xf32>
    %41 = tpu.matmul %39, %40, %cst_11 {dimension_numbers = #tpu.dot_dimension_numbers<[1], [0], [0], [1], [0, 0, 1, 1], [], []>} : vector<8x32xbf16>, vector<32x10xbf16>, vector<8x10xf32> -> vector<8x10xf32>
    %c0_12 = arith.constant 0 : index
    %c0_13 = arith.constant 0 : index
    %42 = vector.load %arg6[%c0_12, %c0_13] : memref<1x10xf32, #tpu.memory_space<vmem>>, vector<1x10xf32>
    %43 = vector.broadcast %42 : vector<1x10xf32> to vector<8x10xf32>
    %44 = arith.addf %41, %43 : vector<8x10xf32>
    %cst_14 = arith.constant dense<0xFF800000> : vector<8xf32>
    %45 = vector.multi_reduction <maximumf>, %44, %cst_14 [1] : vector<8x10xf32> to vector<8xf32>
    %46 = vector.shape_cast %45 : vector<8xf32> to vector<8x1xf32>
    %47 = vector.broadcast %46 : vector<8x1xf32> to vector<8x10xf32>
    %48 = arith.subf %44, %47 : vector<8x10xf32>
    %49 = math.exp %48 : vector<8x10xf32>
    %cst_15 = arith.constant dense<0.000000e+00> : vector<8xf32>
    %50 = vector.multi_reduction <add>, %49, %cst_15 [1] : vector<8x10xf32> to vector<8xf32>
    %51 = vector.shape_cast %50 : vector<8xf32> to vector<8x1xf32>
    %52 = math.log %51 : vector<8x1xf32>
    %53 = vector.broadcast %52 : vector<8x1xf32> to vector<8x10xf32>
    %54 = arith.subf %48, %53 : vector<8x10xf32>
    %c0_16 = arith.constant 0 : index
    %c0_17 = arith.constant 0 : index
    %55 = vector.load %arg7[%c0_16, %c0_17] : memref<8x10xf32, #tpu.memory_space<vmem>>, vector<8x10xf32>
    tpu.vector_store %arg7[%c0_16, %c0_17], %54 {strides = array<i32>} : memref<8x10xf32, #tpu.memory_space<vmem>>, vector<8x10xf32>,
    return
  }
  func.func @transform_0(%arg0: i32) -> i32 {
    %c0_i32 = arith.constant 0 : i32
    %c0_i32_0 = arith.constant 0 : i32
    return %c0_i32 : i32
  }
  func.func @transform_1(%arg0: i32) -> (i32, i32) {
    %c0_i32 = arith.constant 0 : i32
    %c0_i32_0 = arith.constant 0 : i32
    return %arg0, %c0_i32 : i32, i32
  }
  func.func @transform_2(%arg0: i32) -> (i32, i32) {
    %c0_i32 = arith.constant 0 : i32
    %c0_i32_0 = arith.constant 0 : i32
    %c0_i32_1 = arith.constant 0 : i32
    return %c0_i32, %c0_i32_0 : i32, i32
  }
  func.func @transform_3(%arg0: i32) -> (i32, i32) {
    %c0_i32 = arith.constant 0 : i32
    %c0_i32_0 = arith.constant 0 : i32
    %c0_i32_1 = arith.constant 0 : i32
    return %c0_i32, %c0_i32_0 : i32, i32
  }
  func.func @transform_4(%arg0: i32) -> (i32, i32) {
    %c0_i32 = arith.constant 0 : i32
    %c0_i32_0 = arith.constant 0 : i32
    %c0_i32_1 = arith.constant 0 : i32
    return %c0_i32, %c0_i32_0 : i32, i32
  }
  func.func @transform_5(%arg0: i32) -> (i32, i32) {
    %c0_i32 = arith.constant 0 : i32
    %c0_i32_0 = arith.constant 0 : i32
    %c0_i32_1 = arith.constant 0 : i32
    return %c0_i32, %c0_i32_0 : i32, i32
  }
  func.func @transform_6(%arg0: i32) -> (i32, i32) {
    %c0_i32 = arith.constant 0 : i32
    %c0_i32_0 = arith.constant 0 : i32
    return %arg0, %c0_i32 : i32, i32
  }
}

</mosaic_0001>

<bundles_post_ra>
// kernel: tpu_custom_call.1
= control target key start
LH: loop header
LB: loop body
LE: loop exit
PB: predicated region body
PF: predicated region fallthrough
CT: control target
= control target key end

     0   :  { %v309_v1 = vmov 0.0   ;;  %vm310_vm0 = vmmov 0   ;;  %s392_s0 = inlined_call_operand.<no memory space> [shape: s32[1], index: 0, kind: input, shape index: {}]   ;;  %s393_s1 = inlined_call_operand.vmem [shape: f32[8,64], index: 1, kind: input, shape index: {}]   ;;  %s394_s2 = inlined_call_operand.vmem [shape: bf16[64,32], index: 2, kind: input, shape index: {}]   ;;  %s395_s3 = inlined_call_operand.vmem [shape: f32[1,32], index: 3, kind: input, shape index: {}]   ;;  %s396_s4 = inlined_call_operand.vmem [shape: bf16[32,10], index: 4, kind: input, shape index: {}]   ;;  %s397_s5 = inlined_call_operand.vmem [shape: f32[1,10], index: 5, kind: input, shape index: {}]   ;;  %s398_s6 = inlined_call_operand.hbm [shape: f32[8,10], index: 6, kind: output, shape index: {}]  }
   0x1   :  { %v273_v0 = vld [vmem:[%s394_s2] sm:$0xff]   ;;  %250 = vmatprep.subr.bf16.mxu0 %v309_v1  ;;  %262 = vmatprep.subr.bf16.mxu1 %v309_v1  ;;  %v274_v2 = vld [vmem:[%s394_s2 + $0x8] sm:$0xff]   ;;  %v275_v3 = vld [vmem:[%s394_s2 + $0x10] sm:$0xff]  }
   0x2   :  { %251 = vmatpush3.bf16.msra.mxu0 %v273_v0  ;;  %258 = vmatprep.mubr.msk.bf16.mxu0 %vm310_vm0, %v309_v1 }
   0x3   :  { %252 = vmatprep.subr.bf16.mxu0 %v309_v1  ;;  %266 = vmatprep.mubr.msk.bf16.mxu1 %vm310_vm0, %v309_v1 }
   0x6   :  { %253 = vmatpush3.bf16.msra.mxu0 %v274_v2 }
   0x7   :  { %12 = vsyncpa [#allocation4], 0  ;;  %254 = vmatprep.subr.bf16.mxu0 %v309_v1  ;;  %v276_v4 = vld [vmem:[%s394_s2 + $0x18] sm:$0xff]   ;;  %v26_v5 = vld [vmem:[%s393_s1] sm:$0xff]  ;;  %vm67_vm1 = vcmask 523264   ;;  %v112_v9 = vlaneseq  ;;  %vm160_vm3 = vcmask 261120  }
   0x8   :  { %v27_v6 = vpack.c.bf16 %v26_v5, %v26_v5  ;;  %v277_v7 = vld [vmem:[%s396_s4] sm:$0xff]   ;;  %v278_v8 = vld [vmem:[%s396_s4 + $0x8] sm:$0xff]   ;;  %s122_s11 = smul.u32 2654435769, %s392_s0  ;;  %vm204_vm4 = vcmask 80896  }
   0x9   :  { %263 = vmatpush3.bf16.msra.mxu1 %v277_v7  ;;  %v113_v10 = vshrl.u32 %v112_v9, 7  ;;  %v115_v11 = vand.u32 127, %v112_v9  ;;  %v232_v21 = vld [vmem:[%s395_s3] ss:$0 sm:$0xff]  ;;  %s311_s3 = smov [#allocation3]  }
   0xa   :  { %255 = vmatpush3.bf16.msra.mxu0 %v275_v3  ;;  %264 = vmatprep.subr.bf16.mxu1 %v309_v1  ;;  %v123_v14 = vstv %s122_s11  ;;  %v238_v34 = vld [vmem:[%s397_s5] ss:$0 sm:$0xff]  ;;  %s224_s5 = sshll.u32 %s311_s3, 4  ;;  %s225_s5 = int_to_ptr.vmem [resolvable:$true] %s224_s5 }
   0xb   :  { %256 = vmatprep.subr.bf16.mxu0 %v309_v1  ;;  %v119_v12 = vmul.u32 32, %v113_v10  ;;  %s285_s14 = scalar_lea.vmem %s225_s5, 128  ;;  %p290_p1 = scmp.lt.s32.totalorder %s225_s5, %s225_s5 }
   0xc   :  { %p286_p0 = scmp.ne.s32.totalorder %s225_s5, %s285_s14  ;;  %p291_p2 = scmp.lt.s32.totalorder %s285_s14, %s285_s14 }
   0xd   :  { %265 = vmatpush3.bf16.msra.mxu1 %v278_v8  ;;  %v120_v13 = vadd.s32 %v119_v12, %v115_v11 }
   0xe   :  { %257 = vmatpush3.bf16.msra.mxu0 %v276_v4  ;;  %p292_p3 = por %p291_p2, %p290_p1 }
   0xf   :  { %v124_v15 = vadd.s32 %v123_v14, %v120_v13 }
  0x10   :  { %p293_p4 = pnand %p292_p3, %p286_p0 }
  0x11   :  { %259 = vmatmul.mubr.msk.bf16.vlgmr.msra.gmra.mrb[0].mxu0 %vm67_vm1, %v27_v6  ;;  %v125_v16 = vshrl.u32 %v124_v15, 16 }
  0x13   :  { %v126_v17 = vxor.u32 %v125_v16, %v124_v15 }
  0x15   :  { %v127_v18 = vmul.u32 2146121005, %v126_v17 }
  0x17   :  { %v128_v19 = vshrl.u32 %v127_v18, 15 }
  0x19   :  { %v129_v20 = vxor.u32 %v128_v19, %v127_v18 }
  0x1b   :  { %v130_v24 = vmul.u32 2221713035, %v129_v20 }
  0x1d   :  { %v131_v28 = vshrl.u32 %v130_v24, 16 }
  0x1f   :  { %v132_v29 = vxor.u32 %v131_v28, %v130_v24 }
  0x21   :  { %vm133_vm2 = vcmp.ge.u32.totalorder %v132_v29, 858993459 }
  0xe4   :  { %v105_v22 = vpop.f32.mrb[0].mxu0 }
  0xe5   :  { %v106_v23 = vadd.f32 %v232_v21, %v105_v22  ;;  %v260_v25 = vpop.f32.mrb[1].mxu0 }
  0xe6   :  { %v108_v26 = vpop.f32.mrb[2].mxu0 }
  0xe7   :  { %279 = vtanh.f32 %v106_v23  ;;  %v261_v27 = vpop.f32.mrb[3].mxu0 }
  0xf1   :  { %v280_v30 = vpop.eup %279 }
  0xf2   :  { %v134_v31 = vmul.f32 1.25, %v280_v30 }
  0xf4   :  { %v135_v32 = vsel %vm133_vm2, %v134_v31, 0.0 }
  0xf5   :  { %v136_v33 = vpack.c.bf16 %v135_v32, %v135_v32 }
  0xf7   :  { %267 = vmatmul.mubr.msk.bf16.vlgmr.msra.gmra.mrb[0].mxu1 %vm160_vm3, %v136_v33 }
 0x1ca   :  { %v198_v35 = vpop.f32.mrb[0].mxu1 }
 0x1cb   :  { %v199_v36 = vadd.f32 %v238_v34, %v198_v35  ;;  %v268_v37 = vpop.f32.mrb[1].mxu1 }
 0x1cc   :  { %v201_v38 = vpop.f32.mrb[2].mxu1 }
 0x1cd   :  { %v269_v39 = vpop.f32.mrb[3].mxu1  ;;  %v205_v40 = vsel %vm204_vm4, %v199_v36, -inf }
 0x1ce   :  { %206 = vmax.xlane.f32.xlu0 %v205_v40 }
 0x25b   :  { %v207_v41 = vpop.xlane.xlu0 %206 }
 0x25c   :  { %v208_v42 = vsub.f32 %v199_v36, %v207_v41 }
 0x25e   :  { %v209_v43 = vmul.f32 1.442695, %v208_v42 }
 0x260   :  { %281 = vpow2.f32 %v209_v43 }
 0x26a   :  { %v282_v44 = vpop.eup %281 }
 0x26b   :  { %v211_v45 = vsel %vm204_vm4, %v282_v44, 0.0 }
 0x26c   :  { %212 = vadd.xlane.f32.xlu0 %v211_v45 }
 0x2f9   :  { %v213_v46 = vpop.xlane.xlu0 %212 }
 0x2fa   :  { %283 = vlog2.f32 %v213_v46 }
 0x304   :  { %v284_v47 = vpop.eup %283 }
 0x305   :  { %v215_v48 = vmul.f32 0.6931472, %v284_v47 }
 0x307   :  { %v216_v49 = vsub.f32 %v208_v42, %v215_v48 }
 0x309   :  { %217 = vst.msk [vmem:[#allocation3] sm:$0xff] %vm204_vm4, %v216_v49 }
 0x30a   :  { %296 = shalt.err (!%p293_p4)
}
 0x30b   :  { %s297_s17 = scalar_lea.hbm %s398_s6, 128 }
 0x30c   :  { %p298_p5 = scmp.ne.s32.totalorder %s398_s6, %s297_s17  ;;  %p301_p6 = scmp.lt.u32.totalorder %s297_s17, %s398_s6 }
 0x30e   :  { %p303_p7 = pnand %p301_p6, %p298_p5 }
 0x310   :  { %306 = shalt.err (!%p303_p7)
}
 0x311   :  { %227 = dma.vmem_to_hbm [thread:$0]  %s225_s5, 128, %s398_s6, [#allocation4]  }
 0x312   :  { %307 = dma.done.wait [#allocation4], 128  }
 0x313   :  { %308 = vsyncadd [#allocation4], 4294967168 }
 0x314   :  { %231 = vsyncpa [#allocation4], 1 }

</bundles_post_ra>
